<compile_context>
chip_gen: v5e
topology: v5e:2x2
jax: 0.10.0
libtpu: 0.0.40
codegen_flags: <defaults>
</compile_context>

<pallas_src>
import functools

import jax
import jax.numpy as jnp
from jax.experimental import pallas as pl
from jax.experimental.pallas import tpu as pltpu

_LANE = 128


def _round_up(x, m):
    return (x + m - 1) // m * m


def _sublane(dtype):
    return {4: 8, 2: 16, 1: 32}[jnp.dtype(dtype).itemsize]


def prepare_mlp_weights(w1, w2, *, compute_dtype=jnp.bfloat16):
    """One-time (outside the jitted forward) transpose + lane-pad of weights.

    w1: [ff, model_dim]   (to_hidden.weight,   PyTorch layout [out, in])
    w2: [model_dim, ff]   (from_hidden.weight)
    Returns (w1_t, w2_t) with shapes [model_dim_p, ff_p] / [ff_p, model_dim_p],
    zero-padded to multiples of 128 and cast to compute_dtype (bf16 default).
    """
    ff, model_dim = w1.shape
    assert w2.shape == (model_dim, ff)
    dtype = jnp.dtype(compute_dtype)
    model_dim_p = _round_up(model_dim, _LANE)
    ff_p = _round_up(ff, _LANE)
    w1_t = jnp.zeros((model_dim_p, ff_p), dtype)
    w1_t = w1_t.at[:model_dim, :ff].set(w1.T.astype(dtype))
    w2_t = jnp.zeros((ff_p, model_dim_p), dtype)
    w2_t = w2_t.at[:ff, :model_dim].set(w2.T.astype(dtype))
    return w1_t, w2_t


def _mlp_kernel_acc(x_ref, w1_ref, w2_ref, o_ref, acc_ref):
    """General path: accumulate in f32 scratch, cast out on the last ff step."""
    j = pl.program_id(1)

    @pl.when(j == 0)
    def _init():
        acc_ref[...] = jnp.zeros_like(acc_ref)

    # MXU matmul 1 (f32 accumulate) + VPU relu/square filler.
    h = jnp.dot(x_ref[...], w1_ref[...], preferred_element_type=jnp.float32)
    h = jnp.maximum(h, 0.0)
    h = h * h
    # MXU matmul 2, reduced over the ff grid axis into the f32 accumulator.
    acc_ref[...] += jnp.dot(h.astype(w2_ref.dtype), w2_ref[...],
                            preferred_element_type=jnp.float32)

    @pl.when(j == pl.num_programs(1) - 1)
    def _store():
        o_ref[...] = acc_ref[...].astype(o_ref.dtype)


def _mlp_kernel_f32_out(x_ref, w1_ref, w2_ref, o_ref):
    """f32-output path: accumulate directly into the VMEM-resident out block."""
    j = pl.program_id(1)
    h = jnp.dot(x_ref[...], w1_ref[...], preferred_element_type=jnp.float32)
    h = jnp.maximum(h, 0.0)
    h = h * h
    part = jnp.dot(h.astype(w2_ref.dtype), w2_ref[...],
                   preferred_element_type=jnp.float32)

    @pl.when(j == 0)
    def _first():
        o_ref[...] = part

    @pl.when(j > 0)
    def _rest():
        o_ref[...] += part


def _select_tiling(rows, model_dim_p, ff_p, compute_dtype, out_dtype,
                   vmem_budget, tile_rows_req=None, tile_ff_req=None):
    """Pick (tile_rows, tile_ff, single_buffer_weights) from the VMEM budget."""
    itemsize = jnp.dtype(compute_dtype).itemsize
    out_itemsize = jnp.dtype(out_dtype).itemsize
    row_align = _sublane(compute_dtype)
    use_acc = jnp.dtype(out_dtype) != jnp.dtype(jnp.float32)
    budget = max(vmem_budget - (2 << 20), 4 << 20)  # headroom for internal scratch

    def per_row_tile_bytes(tr, tf):
        b = tr * model_dim_p * itemsize * 2           # x tile (double-buffered)
        b += tr * model_dim_p * out_itemsize * 2      # out tile (double-buffered)
        if use_acc:
            b += tr * model_dim_p * 4                 # f32 accumulator scratch
        b += tr * tf * 4                              # f32 h tile
        b += tr * tf * itemsize                       # h cast for 2nd matmul
        return b

    def weight_bytes(tf, n_bufs):
        return 2 * model_dim_p * tf * itemsize * n_bufs

    # Row-tile candidates, largest first; keep >= 2 row steps when rows allow
    # (pipelining + v7x megacore sharding of the "parallel" axis).
    max_tr = max(row_align, _round_up(rows, row_align))
    if rows > row_align:
        max_tr = min(max_tr, max(row_align, _round_up(pl.cdiv(rows, 2), row_align)))
    cands = [1024, 768, 512, 384, 256, 192, 128, 96, 64, 48, 32, 16, 8]
    cands = [c for c in cands if c % row_align == 0 and c <= max_tr]
    if not cands:
        cands = [max_tr]
    if tile_rows_req is not None:
        cands = [min(max(row_align, _round_up(tile_rows_req, row_align)), max_tr)]

    def even_row_steps(tr):
        # v7x: an odd number (>1) of row steps leaves one TensorCore idle for
        # part of the kernel -- nudge to an even step count when cheap.
        n = pl.cdiv(rows, tr)
        if n > 1 and n % 2 == 1:
            tr2 = max(row_align, _round_up(pl.cdiv(rows, n + 1), row_align))
            if pl.cdiv(rows, tr2) % 2 == 0:
                return tr2
        return tr

    # Honour an explicit ff-tile request (streamed weights path).
    if tile_ff_req is not None:
        tf = max(_LANE, (min(tile_ff_req, ff_p) // _LANE) * _LANE)
        while ff_p % tf:
            tf -= _LANE
        for tr in cands:
            if weight_bytes(tf, 2) + per_row_tile_bytes(tr, tf) <= budget:
                return even_row_steps(tr), tf, False
        return even_row_steps(cands[-1]), tf, False

    # 1) Preferred: weights fully VMEM-resident (ff axis collapsed -> constant
    #    weight block index -> weights DMA'd from HBM exactly once).
    for tr in cands:
        per = per_row_tile_bytes(tr, ff_p)
        w_one_buf = weight_bytes(ff_p, 1)
        if 2 * w_one_buf + per <= budget:
            # Single-buffer anyway when the weights are big: the second pipeline
            # buffer is dead VMEM for a constant block index.
            return even_row_steps(tr), ff_p, w_one_buf >= (8 << 20)
        if w_one_buf + per <= budget:
            return even_row_steps(tr), ff_p, True
    # 2) Stream the weights over the ff reduction axis; prefer 256-multiples
    #    (v6e/v7x MXU width) and keep the row tile as large as the budget
    #    allows so the kernel stays above the HBM roofline.
    ff_cands = [c for c in (2048, 1024, 512, 256, 128) if c <= ff_p and ff_p % c == 0]
    if not ff_cands:
        ff_cands = [ff_p]
    for tr in cands:
        for tf in ff_cands:
            if weight_bytes(tf, 2) + per_row_tile_bytes(tr, tf) <= budget:
                return even_row_steps(tr), tf, False
    return even_row_steps(cands[-1]), ff_cands[-1], False


@functools.partial(jax.jit, static_argnames=("tile_rows", "tile_ff"))
def mlp_forward(x, w1_t, w2_t, *, tile_rows=None, tile_ff=None):
    """x: [batch, seq, model_dim]; (w1_t, w2_t) from prepare_mlp_weights."""
    batch, seq, model_dim = x.shape
    model_dim_p, ff_p = w1_t.shape
    assert w2_t.shape == (ff_p, model_dim_p) and model_dim_p >= model_dim
    rows = batch * seq
    out_dtype = x.dtype
    compute_dtype = w1_t.dtype
    itemsize = jnp.dtype(compute_dtype).itemsize
    out_itemsize = jnp.dtype(out_dtype).itemsize

    x2d = x.reshape(rows, model_dim)
    if x2d.dtype != compute_dtype:
        x2d = x2d.astype(compute_dtype)

    # Generation-aware VMEM budget (v5e/v6e: 128 MiB; v7x: 64 MiB per TC).
    try:
        vmem_cap = int(pltpu.get_tpu_info().vmem_capacity_bytes)
    except Exception:
        vmem_cap = 128 * 1024 * 1024
    vmem_limit = vmem_cap * 3 // 4

    tile_rows, tile_ff, single_buf_w = _select_tiling(
        rows, model_dim_p, ff_p, compute_dtype, out_dtype, vmem_limit,
        tile_rows, tile_ff)

    rows_p = _round_up(rows, tile_rows)
    pad_r, pad_d = rows_p - rows, model_dim_p - model_dim
    if pad_r or pad_d:  # elided by XLA when already aligned
        x2d = jnp.pad(x2d, ((0, pad_r), (0, pad_d)))

    n_row_steps = rows_p // tile_rows
    n_ff_steps = ff_p // tile_ff
    grid = (n_row_steps, n_ff_steps)

    x_spec = pl.BlockSpec((tile_rows, model_dim_p), lambda i, j: (i, 0))
    o_spec = pl.BlockSpec((tile_rows, model_dim_p), lambda i, j: (i, 0))
    w1_spec = pl.BlockSpec((model_dim_p, tile_ff), lambda i, j: (0, j))
    w2_spec = pl.BlockSpec((tile_ff, model_dim_p), lambda i, j: (j, 0))
    if single_buf_w and n_ff_steps == 1:
        # Constant weight block index -> second pipeline buffer is dead VMEM.
        try:
            w1_spec = pl.BlockSpec((model_dim_p, tile_ff), lambda i, j: (0, j),
                                   pipeline_mode=pl.Buffered(1))
            w2_spec = pl.BlockSpec((tile_ff, model_dim_p), lambda i, j: (j, 0),
                                   pipeline_mode=pl.Buffered(1))
        except Exception:
            pass  # fall back to default double-buffered weight specs

    if jnp.dtype(out_dtype) == jnp.dtype(jnp.float32):
        kernel = _mlp_kernel_f32_out
        scratch = []
    else:
        kernel = _mlp_kernel_acc
        scratch = [pltpu.VMEM((tile_rows, model_dim_p), jnp.float32)]

    # Honest HBM-traffic hint: x read once, out written once (in its own dtype),
    # weights read once if resident, else once per row tile.
    weight_reads = 1 if n_ff_steps == 1 else n_row_steps
    cost = pl.CostEstimate(
        flops=4 * rows_p * model_dim_p * ff_p,
        transcendentals=0,
        bytes_accessed=(rows_p * model_dim_p * itemsize
                        + rows_p * model_dim_p * out_itemsize
                        + (w1_t.size + w2_t.size) * itemsize * weight_reads),
    )

    out2d = pl.pallas_call(
        kernel,
        out_shape=jax.ShapeDtypeStruct((rows_p, model_dim_p), out_dtype),
        grid_spec=pltpu.PrefetchScalarGridSpec(
            num_scalar_prefetch=0,
            grid=grid,
            in_specs=[x_spec, w1_spec, w2_spec],
            out_specs=o_spec,
            scratch_shapes=scratch,
        ),
        compiler_params=pltpu.CompilerParams(
            dimension_semantics=("parallel", "arbitrary"),
            vmem_limit_bytes=vmem_limit,
        ),
        cost_estimate=cost,
    )(x2d, w1_t, w2_t)

    return out2d[:rows, :model_dim].reshape(batch, seq, model_dim)


def _reference(x, w1, w2):
    hi = jax.lax.Precision.HIGHEST
    h = jnp.maximum(jnp.einsum("bsd,fd->bsf", x, w1, precision=hi), 0.0) ** 2
    return jnp.einsum("bsf,df->bsd", h, w2, precision=hi)


if __name__ == "__main__":
    # Small shapes consistent with the module.
    batch, seq, model_dim, ff_dim = 2, 8, 32, 64

    key = jax.random.PRNGKey(0)
    kx, k1, k2 = jax.random.split(key, 3)

    x = jax.random.normal(kx, (batch, seq, model_dim), dtype=jnp.float32)
    # PyTorch nn.Linear weight layout: [out_features, in_features]
    w1 = jax.random.normal(k1, (ff_dim, model_dim), dtype=jnp.float32) * 0.05
    w2 = jax.random.normal(k2, (model_dim, ff_dim), dtype=jnp.float32) * 0.05

    ref = _reference(x, w1, w2)

    # f32 compute path: tight parity with the f32 reference.
    w1_f32, w2_f32 = prepare_mlp_weights(w1, w2, compute_dtype=jnp.float32)
    out_f32 = jax.block_until_ready(mlp_forward(x, w1_f32, w2_f32))
    assert out_f32.shape == (batch, seq, model_dim)
    assert jnp.allclose(out_f32, ref, atol=2e-4, rtol=1e-3), "f32 mismatch vs reference"

    # Default bf16 compute path (f32 accumulation) -- bf16-level tolerance.
    w1_bf, w2_bf = prepare_mlp_weights(w1, w2)
    out_bf = jax.block_until_ready(mlp_forward(x, w1_bf, w2_bf))
    assert out_bf.shape == (batch, seq, model_dim)
    assert jnp.allclose(out_bf, ref, atol=1e-2, rtol=1e-1), "bf16 mismatch vs reference"

    print("KERNEL_OK")
</pallas_src>

<mosaic_0001>
module attributes {stable_mosaic.version = 11 : i64} {
  func.func @_mlp_kernel_f32_out(%arg0: i32, %arg1: i32, %arg2: memref<8x128xf32, #tpu.memory_space<vmem>>, %arg3: memref<128x128xf32, #tpu.memory_space<vmem>>, %arg4: memref<128x128xf32, #tpu.memory_space<vmem>>, %arg5: memref<8x128xf32, #tpu.memory_space<vmem>>) attributes {dimension_semantics = [#tpu.dimension_semantics<parallel>, #tpu.dimension_semantics<arbitrary>], iteration_bounds = array<i64: 2, 1>, scalar_prefetch = 0 : i64, scratch_operands = 0 : i64, tpu.core_type = #tpu.core_type<tc>, window_params = [{transform_indices = @transform_0, window_bounds = array<i64: 8, 128>}, {transform_indices = @transform_1, window_bounds = array<i64: 128, 128>}, {transform_indices = @transform_2, window_bounds = array<i64: 128, 128>}, {transform_indices = @transform_3, window_bounds = array<i64: 8, 128>}]} {
    %c0 = arith.constant 0 : index
    %c0_0 = arith.constant 0 : index
    %0 = vector.load %arg2[%c0, %c0_0] : memref<8x128xf32, #tpu.memory_space<vmem>>, vector<8x128xf32>
    %c0_1 = arith.constant 0 : index
    %c0_2 = arith.constant 0 : index
    %1 = vector.load %arg3[%c0_1, %c0_2] : memref<128x128xf32, #tpu.memory_space<vmem>>, vector<128x128xf32>
    %cst = arith.constant dense<0.000000e+00> : vector<8x128xf32>
    %2 = tpu.matmul %0, %1, %cst {dimension_numbers = #tpu.dot_dimension_numbers<[1], [0], [0], [1], [0, 0, 1, 1], [], []>} : vector<8x128xf32>, vector<128x128xf32>, vector<8x128xf32> -> vector<8x128xf32>
    %cst_3 = arith.constant 0.000000e+00 : f32
    %3 = vector.broadcast %cst_3 : f32 to vector<8x128xf32>
    %4 = arith.maximumf %2, %3 : vector<8x128xf32>
    %5 = arith.mulf %4, %4 : vector<8x128xf32>
    %c0_4 = arith.constant 0 : index
    %c0_5 = arith.constant 0 : index
    %6 = vector.load %arg4[%c0_4, %c0_5] : memref<128x128xf32, #tpu.memory_space<vmem>>, vector<128x128xf32>
    %cst_6 = arith.constant dense<0.000000e+00> : vector<8x128xf32>
    %7 = tpu.matmul %5, %6, %cst_6 {dimension_numbers = #tpu.dot_dimension_numbers<[1], [0], [0], [1], [0, 0, 1, 1], [], []>} : vector<8x128xf32>, vector<128x128xf32>, vector<8x128xf32> -> vector<8x128xf32>
    %c0_i32 = arith.constant 0 : i32
    %8 = arith.cmpi eq, %arg1, %c0_i32 : i32
    %9 = arith.extui %8 : i1 to i32
    %c0_i32_7 = arith.constant 0 : i32
    %10 = arith.cmpi ne, %9, %c0_i32_7 : i32
    scf.if %10 {
      %c0_10 = arith.constant 0 : index
      %c0_11 = arith.constant 0 : index
      %14 = vector.load %arg5[%c0_10, %c0_11] : memref<8x128xf32, #tpu.memory_space<vmem>>, vector<8x128xf32>
      tpu.vector_store %arg5[%c0_10, %c0_11], %7 {strides = array<i32>} : memref<8x128xf32, #tpu.memory_space<vmem>>, vector<8x128xf32>,
    } else {
    }
    %c0_i32_8 = arith.constant 0 : i32
    %11 = arith.cmpi sgt, %arg1, %c0_i32_8 : i32
    %12 = arith.extui %11 : i1 to i32
    %c0_i32_9 = arith.constant 0 : i32
    %13 = arith.cmpi ne, %12, %c0_i32_9 : i32
    scf.if %13 {
      %c0_10 = arith.constant 0 : index
      %c0_11 = arith.constant 0 : index
      %14 = vector.load %arg5[%c0_10, %c0_11] : memref<8x128xf32, #tpu.memory_space<vmem>>, vector<8x128xf32>
      %15 = arith.addf %14, %7 : vector<8x128xf32>
      %c0_12 = arith.constant 0 : index
      %c0_13 = arith.constant 0 : index
      %16 = vector.load %arg5[%c0_12, %c0_13] : memref<8x128xf32, #tpu.memory_space<vmem>>, vector<8x128xf32>
      tpu.vector_store %arg5[%c0_12, %c0_13], %15 {strides = array<i32>} : memref<8x128xf32, #tpu.memory_space<vmem>>, vector<8x128xf32>,
    } else {
    }
    return
  }
  func.func @transform_0(%arg0: i32, %arg1: i32) -> (i32, i32) {
    %c0_i32 = arith.constant 0 : i32
    %c0_i32_0 = arith.constant 0 : i32
    return %arg0, %c0_i32 : i32, i32
  }
  func.func @transform_1(%arg0: i32, %arg1: i32) -> (i32, i32) {
    %c0_i32 = arith.constant 0 : i32
    %c0_i32_0 = arith.constant 0 : i32
    return %c0_i32, %arg1 : i32, i32
  }
  func.func @transform_2(%arg0: i32, %arg1: i32) -> (i32, i32) {
    %c0_i32 = arith.constant 0 : i32
    %c0_i32_0 = arith.constant 0 : i32
    return %arg1, %c0_i32 : i32, i32
  }
  func.func @transform_3(%arg0: i32, %arg1: i32) -> (i32, i32) {
    %c0_i32 = arith.constant 0 : i32
    %c0_i32_0 = arith.constant 0 : i32
    return %arg0, %c0_i32 : i32, i32
  }
}

</mosaic_0001>

<bundles_post_ra>
// kernel: mlp_forward.1
= control target key start
LH: loop header
LB: loop body
LE: loop exit
PB: predicated region body
PF: predicated region fallthrough
CT: control target
= control target key end

     0   :  { %8 = vsyncpa [#allocation3], 0  ;;  %s648_s0 = inlined_call_operand.vmem [shape: f32[16,128], index: 0, kind: input, shape index: {}]   ;;  %s649_s1 = inlined_call_operand.hbm [shape: f32[128,128], index: 1, kind: input, shape index: {}]   ;;  %s650_s2 = inlined_call_operand.hbm [shape: f32[128,128], index: 2, kind: input, shape index: {}]   ;;  %s651_s3 = inlined_call_operand.vmem [shape: f32[16,128], index: 3, kind: output, shape index: {}]  }
   0x1   :  { %9 = vsyncpa [#allocation5], 0  ;;  %s579_s12 = smov 0   ;;  %s581_s13 = smov 0  }
   0x2   :  { %s583_s14 = smov 0  }
   0x3 LB: > { %s403_s15 = sadd.s32 4294967295, %s553_s14   ;;  %s27_s16 = sadd.s32 1, %s549_s13  ;;  %s553_s14 = sphi %s583_s14, %s15_s14   ;;  %s549_s13 = sphi %s581_s13, %s655_s13   ;;  %s545_s12 = sphi %s579_s12, %s654_s12  }
   0x4   : > { %p29_p0 = scmp.ge.s32.totalorder %s27_s16, 2  ;;  %p405_p1 = scmp.ge.s32.totalorder %s553_s14, 1 }
   0x5   : > { %p136_p2 = scmp.lt.s32.totalorder %s553_s14, 3  ;;  %p604_p4 = scmp.eq.s32.totalorder %s403_s15, 0 }
   0x6   : > { %s657_s16 = smov (%p29_p0, %s27_s16), 0  ;;  %s149_s21 = sshll.u32 %s649_s1, 4  ;;  %s150_s21 = int_to_ptr.hbm [resolvable:$true] %s149_s21 }
   0x7   : > { %p600_p3 = pnand %p405_p1, %p136_p2  ;;  %s555_s22 = smov [#allocation2]  }
   0x8   : > { %s151_s23 = sshll.u32 %s555_s22, 4  ;;  %s166_s26 = sshll.u32 %s650_s2, 4  ;;  %s152_s23 = int_to_ptr.vmem [resolvable:$true] %s151_s23  ;;  %s167_s26 = int_to_ptr.hbm [resolvable:$true] %s166_s26 }
   0x9   : > { %p424_p5 = pneg %p600_p3  ;;  %s556_s27 = smov 128  }
   0xa   : > { %s557_s28 = smov 8   ;;  %s558_s29 = smov [#allocation4]  }
   0xb   : > { %p425_p6 = pnand %p604_p4, %p424_p5  ;;  %s168_s30 = sshll.u32 %s558_s29, 4  ;;  %s169_s30 = int_to_ptr.vmem [resolvable:$true] %s168_s30 }
   0xc   : > { %191 = sbr.rel (%p600_p3) target bundleno = 309 (0x135), region = 32 }
   0xd   : > { %427 = dma.hbm_to_vmem [thread:$0]  (!%p425_p6), %s150_s21, 2048, %s152_s23, [#allocation3], %s556_s27, %s556_s27, %s557_s28  }
   0xe   : > { %430 = dma.hbm_to_vmem [thread:$0]  (!%p425_p6), %s167_s26, 2048, %s169_s30, [#allocation5], %s556_s27, %s556_s27, %s557_s28  }
  0x11   : > { %536 = dma.done.wait (%p604_p4), [#allocation3], 2048  }
  0x12   : > { %538 = vsyncadd (%p604_p4), [#allocation3], 4294965248 }
  0x13   : > { %540 = dma.done.wait (%p604_p4), [#allocation5], 2048  }
  0x14   : > { %542 = vsyncadd (%p604_p4), [#allocation5], 4294965248  ;;  %v244_v0 = vld [vmem:[#allocation2 + $0x78] sm:$0xff]  ;;  %v243_v1 = vld [vmem:[#allocation2 + $0x70] sm:$0xff]  ;;  %p219_p7 = scmp.lt.s32.totalorder %s545_s12, 1 }
  0x15   : > { %245 = vmatpush.msra.mxu0 %v244_v0  ;;  %v242_v2 = vld [vmem:[#allocation2 + $0x68] sm:$0xff]  ;;  %v241_v3 = vld [vmem:[#allocation2 + $0x60] sm:$0xff]  ;;  %v282_v4 = vld [vmem:[#allocation4 + $0x78] sm:$0xff] }
  0x16   : > { %v240_v5 = vld [vmem:[#allocation2 + $0x58] sm:$0xff]  ;;  %283 = vmatpush.msra.mxu1 %v282_v4  ;;  %v281_v6 = vld [vmem:[#allocation4 + $0x70] sm:$0xff]  ;;  %v280_v7 = vld [vmem:[#allocation4 + $0x68] sm:$0xff]  ;;  %s659_s12 = smov (!%p219_p7, %s545_s12), 1 }
  0x17   : > { %246 = vmatpush.msra.mxu0 %v243_v1  ;;  %v239_v8 = vld [vmem:[#allocation2 + $0x50] sm:$0xff]  ;;  %v279_v9 = vld [vmem:[#allocation4 + $0x60] sm:$0xff]  ;;  %v238_v10 = vld [vmem:[#allocation2 + $0x48] sm:$0xff]  ;;  %s412_s4 = sshll.u32 %s659_s12, 3 }
  0x18   : > { %284 = vmatpush.msra.mxu1 %v281_v6  ;;  %v278_v11 = vld [vmem:[#allocation4 + $0x58] sm:$0xff]  ;;  %v237_v12 = vld [vmem:[#allocation2 + $0x40] sm:$0xff]  ;;  %v277_v13 = vld [vmem:[#allocation4 + $0x50] sm:$0xff]  ;;  %s222_s7 = scalar_lea.vmem %s648_s0, %s412_s4  ;;  %s227_s10 = scalar_lea.vmem %s651_s3, %s412_s4 }
  0x19   : > { %247 = vmatpush.msra.mxu0 %v242_v2  ;;  %v236_v14 = vld [vmem:[#allocation2 + $0x38] sm:$0xff]  ;;  %v276_v15 = vld [vmem:[#allocation4 + $0x48] sm:$0xff]  ;;  %v235_v16 = vld [vmem:[#allocation2 + $0x30] sm:$0xff] }
  0x1a   : > { %285 = vmatpush.msra.mxu1 %v280_v7  ;;  %v275_v17 = vld [vmem:[#allocation4 + $0x40] sm:$0xff]  ;;  %v234_v18 = vld [vmem:[#allocation2 + $0x28] sm:$0xff]  ;;  %v274_v19 = vld [vmem:[#allocation4 + $0x38] sm:$0xff] }
  0x1b   : > { %248 = vmatpush.msra.mxu0 %v241_v3  ;;  %v233_v20 = vld [vmem:[#allocation2 + $0x20] sm:$0xff]  ;;  %v273_v21 = vld [vmem:[#allocation4 + $0x30] sm:$0xff]  ;;  %v232_v22 = vld [vmem:[#allocation2 + $0x18] sm:$0xff] }
  0x1c   : > { %286 = vmatpush.msra.mxu1 %v279_v9  ;;  %v272_v23 = vld [vmem:[#allocation4 + $0x28] sm:$0xff]  ;;  %v231_v24 = vld [vmem:[#allocation2 + $0x10] sm:$0xff]  ;;  %v271_v25 = vld [vmem:[#allocation4 + $0x20] sm:$0xff] }
  0x1d   : > { %249 = vmatpush.msra.mxu0 %v240_v5  ;;  %v230_v26 = vld [vmem:[#allocation2 + $0x8] sm:$0xff]  ;;  %v270_v27 = vld [vmem:[#allocation4 + $0x18] sm:$0xff]  ;;  %v229_v28 = vld [vmem:[#allocation2] sm:$0xff] }
  0x1e   : > { %287 = vmatpush.msra.mxu1 %v278_v11  ;;  %v228_v29 = vld [vmem:[%s222_s7] sm:$0xff]  ;;  %v269_v30 = vld [vmem:[#allocation4 + $0x10] sm:$0xff]  ;;  %v268_v31 = vld [vmem:[#allocation4 + $0x8] sm:$0xff] }
  0x1f   : > { %250 = vmatpush.msra.mxu0 %v239_v8  ;;  %v267_v32 = vld [vmem:[#allocation4] sm:$0xff] }
  0x20   : > { %288 = vmatpush.msra.mxu1 %v277_v13 }
  0x21   : > { %251 = vmatpush.msra.mxu0 %v238_v10 }
  0x22   : > { %289 = vmatpush.msra.mxu1 %v276_v15 }
  0x23   : > { %252 = vmatpush.msra.mxu0 %v237_v12 }
  0x24   : > { %290 = vmatpush.msra.mxu1 %v275_v17 }
  0x25   : > { %253 = vmatpush.msra.mxu0 %v236_v14 }
  0x26   : > { %291 = vmatpush.msra.mxu1 %v274_v19 }
  0x27   : > { %254 = vmatpush.msra.mxu0 %v235_v16 }
  0x28   : > { %292 = vmatpush.msra.mxu1 %v273_v21 }
  0x29   : > { %255 = vmatpush.msra.mxu0 %v234_v18 }
  0x2a   : > { %293 = vmatpush.msra.mxu1 %v272_v23 }
  0x2b   : > { %256 = vmatpush.msra.mxu0 %v233_v20 }
  0x2c   : > { %294 = vmatpush.msra.mxu1 %v271_v25 }
  0x2d   : > { %257 = vmatpush.msra.mxu0 %v232_v22 }
  0x2e   : > { %295 = vmatpush.msra.mxu1 %v270_v27 }
  0x2f   : > { %258 = vmatpush.msra.mxu0 %v231_v24 }
  0x30   : > { %296 = vmatpush.msra.mxu1 %v269_v30 }
  0x31   : > { %259 = vmatpush.msra.mxu0 %v230_v26 }
  0x32   : > { %297 = vmatpush.msra.mxu1 %v268_v31 }
  0x33   : > { %260 = vmatpush.msra.mxu0 %v229_v28 }
  0x34   : > { %261 = vmatmul.f32.vlgmr.msra.gmra.mxu0 %v228_v29  ;;  %298 = vmatpush.msra.mxu1 %v267_v32 }
  0xb1   : > { %v262_v33 = vpop.f32.mrf.mxu0 }
  0xb2   : > { %v265_v34 = vmax.f32 %v262_v33, 0.0 }
  0xb4   : > { %v266_v35 = vmul.f32 %v265_v34, %v265_v34 }
  0xb6   : > { %299 = vmatmul.f32.vlgmr.msra.gmra.mxu1 %v266_v35 }
 0x133   : > { %v300_v36 = vpop.f32.mrf.mxu1 }
 0x134   : > { %307 = vst [vmem:[%s227_s10] sm:$0xff] %v300_v36 }
 0x135 PF: > { %s15_s14 = sadd.s32 1, %s553_s14   ;;  %s654_s12 = smov %s549_s13 }
 0x136   : > { %p12_p8 = scmp.ge.s32.totalorder %s15_s14, 4   ;;  %s655_s13 = smov %s657_s16 }
 0x138   :  { %14 = sbr.rel (!%p12_p8) target bundleno = 3 (0x3), region = 81 }
 0x13d   :  { %334 = vsyncpa [#allocation3], 1 }
 0x13e   :  { %336 = vsyncpa [#allocation3 + $0x1], 1 }
 0x13f   :  { %337 = vsyncpa [#allocation5], 1 }

</bundles_post_ra>
